<compile_context>
chip_gen: v5e
topology: v5e:2x2
jax: 0.10.0
libtpu: 0.0.40
codegen_flags: <defaults>
</compile_context>

<pallas_src>
import jax
import jax.numpy as jnp
from jax.experimental import pallas as pl
from jax.experimental.pallas import tpu as pltpu


def center_crop(x: jax.Array) -> jax.Array:
    """CenterCrop.forward == identity.  No kernel, no HBM read/write."""
    # TODO(synk): if CenterCrop ever takes a crop size smaller than (H, W),
    # express it as a lax.slice / offset index_map instead of identity.
    return x


def _copy_kernel(x_ref, o_ref):
    # Elementwise identity on the current lane-dense tile.
    o_ref[...] = x_ref[...]


_TARGET_TILE_BYTES = 2 * 1024 * 1024  # 2 MiB/tile -> (in+out)*2 bufs = 8 MiB pipelined


def _choose_2d_tiling(total_elems: int, itemsize: int, sublane: int):
    """Pick a lane-dense (rows, width) flattening and an aligned row tile.

    Returns (rows, width, tile_rows) or None if no multiple-of-128 width
    divides the element count.
    """
    for width in (4096, 2048, 1024, 512, 256, 128):
        if total_elems % width != 0:
            continue
        rows = total_elems // width
        target_rows = max(sublane, _TARGET_TILE_BYTES // (width * itemsize))
        if rows <= target_rows:
            return rows, width, rows  # one block covers all rows (full extent)
        tr = (target_rows // sublane) * sublane
        while tr >= sublane:
            if rows % tr == 0:  # even grid, (sublane, 128)-aligned block
                return rows, width, tr
            tr -= sublane
        # no aligned divisor for this width; try a narrower width
    return None


def center_crop_copy(x: jax.Array) -> jax.Array:
    """Identity as a Pallas HBM->HBM copy (only for when an op boundary is
    genuinely required).  Lane-dense 2D tiling, MiB-scale blocks."""
    total = x.size
    itemsize = jnp.dtype(x.dtype).itemsize
    sublane = {1: 32, 2: 16}.get(itemsize, 8)  # packed-dtype friendly sublane tile
    tiling = _choose_2d_tiling(total, itemsize, sublane)

    if tiling is None:
        # Fallback: single full-array block (block dims == array dims, always legal).
        return pl.pallas_call(
            _copy_kernel,
            out_shape=jax.ShapeDtypeStruct(x.shape, x.dtype),
        )(x)

    rows, width, tile_rows = tiling
    x2 = x.reshape(rows, width)
    grid = (rows // tile_rows,)

    y2 = pl.pallas_call(
        _copy_kernel,
        out_shape=jax.ShapeDtypeStruct((rows, width), x.dtype),
        grid_spec=pl.GridSpec(
            grid=grid,
            in_specs=[pl.BlockSpec((tile_rows, width), lambda i: (i, 0))],
            out_specs=pl.BlockSpec((tile_rows, width), lambda i: (i, 0)),
        ),
        compiler_params=pltpu.CompilerParams(
            # v5e/v6e: no-op (1 TC). v7x: shards the copy across both TCs.
            dimension_semantics=("parallel",),
        ),
    )(x2)
    return y2.reshape(x.shape)


if __name__ == "__main__":
    key = jax.random.PRNGKey(0)
    x = jax.random.normal(key, (2, 4, 16, 16), dtype=jnp.float32)

    # Production path: identity, zero HBM traffic (perf feedback #1).
    y_fast = center_crop(x)
    assert y_fast is x

    # Pallas copy path (exercised here to validate the kernel on TPU).
    y_kernel = jax.block_until_ready(center_crop_copy(x))

    assert y_kernel.shape == x.shape, (y_kernel.shape, x.shape)
    assert y_kernel.dtype == x.dtype, (y_kernel.dtype, x.dtype)
    assert bool(jnp.all(y_kernel == x)), "identity kernel mismatch"

    print("KERNEL_OK")
</pallas_src>

<mosaic_0001>
module attributes {stable_mosaic.version = 11 : i64} {
  func.func @_copy_kernel(%arg0: i32, %arg1: memref<1x2048xf32, #tpu.memory_space<vmem>>, %arg2: memref<1x2048xf32, #tpu.memory_space<vmem>>) attributes {dimension_semantics = [#tpu.dimension_semantics<parallel>], iteration_bounds = array<i64: 1>, scalar_prefetch = 0 : i64, scratch_operands = 0 : i64, tpu.core_type = #tpu.core_type<tc>, window_params = [{transform_indices = @transform_0, window_bounds = array<i64: 1, 2048>}, {transform_indices = @transform_1, window_bounds = array<i64: 1, 2048>}]} {
    %c0 = arith.constant 0 : index
    %c0_0 = arith.constant 0 : index
    %0 = vector.load %arg1[%c0, %c0_0] : memref<1x2048xf32, #tpu.memory_space<vmem>>, vector<1x2048xf32>
    %c0_1 = arith.constant 0 : index
    %c0_2 = arith.constant 0 : index
    %1 = vector.load %arg2[%c0_1, %c0_2] : memref<1x2048xf32, #tpu.memory_space<vmem>>, vector<1x2048xf32>
    tpu.vector_store %arg2[%c0_1, %c0_2], %0 {strides = array<i32>} : memref<1x2048xf32, #tpu.memory_space<vmem>>, vector<1x2048xf32>,
    return
  }
  func.func @transform_0(%arg0: i32) -> (i32, i32) {
    %c0_i32 = arith.constant 0 : i32
    %c0_i32_0 = arith.constant 0 : i32
    return %arg0, %c0_i32 : i32, i32
  }
  func.func @transform_1(%arg0: i32) -> (i32, i32) {
    %c0_i32 = arith.constant 0 : i32
    %c0_i32_0 = arith.constant 0 : i32
    return %arg0, %c0_i32 : i32, i32
  }
}

</mosaic_0001>

<bundles_post_ra>
// kernel: tpu_custom_call.1
= control target key start
LH: loop header
LB: loop body
LE: loop exit
PB: predicated region body
PF: predicated region fallthrough
CT: control target
= control target key end

     0   :  { %6 = vsyncpa [#allocation3], 0  ;;  %s116_s0 = inlined_call_operand.hbm [shape: f32[1,2048], index: 0, kind: input, shape index: {}]   ;;  %s117_s1 = inlined_call_operand.hbm [shape: f32[1,2048], index: 1, kind: output, shape index: {}]  }
   0x1   :  { %7 = vsyncpa [#allocation4], 0  ;;  %s13_s8 = sshll.u32 %s116_s0, 4  ;;  %s98_s9 = smov [#allocation2]   ;;  %s14_s8 = int_to_ptr.hbm [resolvable:$true] %s13_s8 }
   0x2   :  { %s15_s10 = sshll.u32 %s98_s9, 4  ;;  %s16_s10 = int_to_ptr.vmem [resolvable:$true] %s15_s10 }
   0x3   :  { %18 = dma.hbm_to_vmem [thread:$0]  %s14_s8, 256, %s16_s10, [#allocation3]  }
   0x4   :  { %94 = dma.done.wait [#allocation3], 256  }
   0x5   :  { %95 = vsyncadd [#allocation3], 4294967040  ;;  %s99_s11 = smov [#allocation5]   ;;  %s34_s15 = sshll.u32 %s117_s1, 4  ;;  %v23_v0 = vld [vmem:[#allocation2] sm:$0xff]  ;;  %v24_v1 = vld [vmem:[#allocation2 + $0x8] sm:$0xff]  ;;  %s35_s15 = int_to_ptr.hbm [resolvable:$true] %s34_s15 }
   0x6   :  { %s32_s12 = sshll.u32 %s99_s11, 4  ;;  %25 = vst [vmem:[#allocation5] sm:$0xff] %v23_v0  ;;  %s33_s12 = int_to_ptr.vmem [resolvable:$true] %s32_s12 }
   0x7   :  { %26 = vst [vmem:[#allocation5 + $0x8] sm:$0xff] %v24_v1 }
   0x8   :  { %37 = dma.vmem_to_hbm [thread:$0]  %s33_s12, 256, %s35_s15, [#allocation4]  }
   0x9   :  { %96 = dma.done.wait [#allocation4], 256  }
   0xa   :  { %97 = vsyncadd [#allocation4], 4294967040 }
   0xb   :  { %42 = vsyncpa [#allocation3], 1 }
   0xc   :  { %43 = vsyncpa [#allocation4], 1 }

</bundles_post_ra>
